<compile_context>
chip_gen: v5e
topology: v5e:2x2
jax: 0.10.0
libtpu: 0.0.40
codegen_flags: <defaults>
</compile_context>

<pallas_src>
import functools

import jax
import jax.numpy as jnp
import numpy as np
from jax.experimental import pallas as pl
from jax.experimental.pallas import tpu as pltpu


def _monotonic_kernel(x_ref, w1_ref, b1_ref, w2_ref, b2_ref, w3_ref,
                      scale_ref, offset_ref, out_ref, *, hidden_dtype):
    """One batch tile of monotonic_net.forward.

    out = offset + scale * (h + l3(sigmoid(l2(h)))),   h = l1(x),
    with scale/offset precomputed from the weight-only gamma_eta(0)/gamma_eta(1)
    evaluations (b3 folded into offset).
    """
    x = x_ref[...]                                    # (TB, D) f32
    w1 = w1_ref[...]                                  # (1, D)  f32
    b1 = b1_ref[...]                                  # (1, 1)  f32

    # l1: Linear(in_dim, 1) -> per-row lane reduction (VPU + XLU), f32.
    h = jnp.sum(x * w1, axis=-1, keepdims=True) + b1  # (TB, 1) f32

    # l2 affine + sigmoid in hidden_dtype (bf16 on v6e/v7x: packed EUP/VPU,
    # half the (TB,H) VMEM intermediates).  h itself stays f32 for the output.
    hh = h.astype(hidden_dtype)                       # (TB, 1)
    w2 = w2_ref[...].astype(hidden_dtype)             # (1, H)
    b2 = b2_ref[...].astype(hidden_dtype)             # (1, H)
    z = hh * w2 + b2                                  # (TB, H)
    # sigmoid(z) == 0.5 * tanh(0.5 * z) + 0.5 : exactly one EUP push / element.
    s = 0.5 * jnp.tanh(0.5 * z) + 0.5                 # (TB, H) hidden_dtype

    w3 = w3_ref[...]                                  # (1, H) f32
    if jnp.dtype(hidden_dtype) == jnp.float32:
        # f32 fallback (v2-v5: no bf16 VPU/EUP): fused multiply + lane reduce.
        red = jnp.sum(s * w3, axis=-1, keepdims=True)               # (TB,1) f32
    else:
        # bf16 path: feed the otherwise-idle MXU, accumulate in f32.
        red = jax.lax.dot_general(
            s, w3.astype(hidden_dtype),
            dimension_numbers=(((1,), (1,)), ((), ())),
            preferred_element_type=jnp.float32)                     # (TB,1) f32

    gt = h + red                                      # (TB, 1) f32
    # Epilogue: one FMA per row (scale/offset are grid-invariant inputs).
    out_ref[...] = (offset_ref[...] + scale_ref[...] * gt).astype(out_ref.dtype)


def _default_hidden_dtype():
    """bf16 where the VPU/EUP have a bf16 path (v6e, v7x); f32 otherwise."""
    try:
        kind = jax.devices()[0].device_kind.lower()
    except Exception:
        return jnp.float32
    if any(f"v{n}" in kind for n in (2, 3, 4, 5)):
        return jnp.float32
    return jnp.bfloat16


def monotonic_net_forward(x, params, min_value, max_value, *,
                          block_rows=512, hidden_dtype=None):
    """x: (B, in_dim) float32 -> (B, 1) float32.  Fused monotonic_net.forward."""
    w1, b1, w2, b2, w3, b3 = params
    B, D = x.shape
    H = w2.shape[1]
    if hidden_dtype is None:
        hidden_dtype = _default_hidden_dtype()
    hidden_dtype = jnp.dtype(hidden_dtype)

    gamma_0 = jnp.float32(-np.log(max_value))
    gamma_1 = jnp.float32(-np.log(min_value))

    # gamma_eta on all-zeros / all-ones depends only on the weights:
    #   h(zeros) = b1,  h(ones) = sum(w1) + b1.
    # Fold the whole rescale into two (1,1) scalars, computed once in plain-JAX
    # f32 (tiny, fused by XLA) instead of per grid step inside the kernel.
    def gamma_eta_row(h):                                   # h: (1, 1)
        s = jax.nn.sigmoid(h * w2 + b2)                     # (1, H)
        return h + jnp.sum(s * w3, axis=-1, keepdims=True) + b3

    g0 = gamma_eta_row(b1)
    g1 = gamma_eta_row(jnp.sum(w1, axis=-1, keepdims=True) + b1)
    # NOTE: no epsilon guard on (g1 - g0), matching the PyTorch module; with
    # the module's U(0,1) weight init g1 > g0 always.
    scale = (gamma_1 - gamma_0) / (g1 - g0)                 # (1, 1)
    offset = gamma_0 + scale * (b3 - g0)                    # (1, 1), b3 folded

    # Batch tiling: sublane-aligned, and with >= 2 grid steps whenever B >= 16
    # so the "parallel" axis can shard across v7x's two TensorCores.
    tb = min(block_rows, B)
    if B >= 16:
        tb = min(tb, pl.cdiv(B, 2))
    if tb != B:
        tb = max(8, (tb // 8) * 8)
    grid = (pl.cdiv(B, tb),)

    kernel = functools.partial(_monotonic_kernel, hidden_dtype=hidden_dtype)
    weight = lambda shape: pl.BlockSpec(shape, lambda i: (0, 0))

    return pl.pallas_call(
        kernel,
        out_shape=jax.ShapeDtypeStruct((B, 1), jnp.float32),
        grid=grid,
        in_specs=[
            pl.BlockSpec((tb, D), lambda i: (i, 0)),  # x, tiled over the batch
            weight((1, D)),    # w1  (Linear(in_dim,1).weight as a row vector)
            weight((1, 1)),    # b1
            weight((1, H)),    # w2  (Linear(1,1024).weight^T)
            weight((1, H)),    # b2
            weight((1, H)),    # w3  (Linear(1024,1).weight)
            weight((1, 1)),    # scale   (precomputed, weight-only)
            weight((1, 1)),    # offset  (precomputed, weight-only; b3 folded)
        ],
        out_specs=pl.BlockSpec((tb, 1), lambda i: (i, 0)),
        # Footprint is a few MiB (double-buffered (tb,D) x + ~3 (tb,H) hidden
        # intermediates); default scoped-VMEM limits are plenty on all chips,
        # so no vmem_limit_bytes override.
        compiler_params=pltpu.CompilerParams(
            dimension_semantics=("parallel",)),
    )(x, w1, b1, w2, b2, w3, scale, offset)


def init_params(key, in_dim, hidden=1024):
    """Matches tilde_gamma_eta._init_weight(): weights ~ U(0,1), biases = 0."""
    k1, k2, k3 = jax.random.split(key, 3)
    w1 = jax.random.uniform(k1, (1, in_dim), jnp.float32)
    b1 = jnp.zeros((1, 1), jnp.float32)
    w2 = jax.random.uniform(k2, (1, hidden), jnp.float32)
    b2 = jnp.zeros((1, hidden), jnp.float32)
    w3 = jax.random.uniform(k3, (1, hidden), jnp.float32)
    b3 = jnp.zeros((1, 1), jnp.float32)
    return (w1, b1, w2, b2, w3, b3)


def _reference(x, params, min_value, max_value):
    """Pure-JAX reference of monotonic_net.forward."""
    w1, b1, w2, b2, w3, b3 = params

    def gamma_eta(inp):
        h = inp @ w1.T + b1[0]                  # (B, 1)
        z = h @ w2 + b2                         # (B, H)
        s = jax.nn.sigmoid(z)
        return h + (s @ w3.T + b3[0])           # (B, 1)

    gamma_0 = -np.log(max_value)
    gamma_1 = -np.log(min_value)
    g0 = gamma_eta(jnp.zeros_like(x))
    g1 = gamma_eta(jnp.ones_like(x))
    gt = gamma_eta(x)
    return gamma_0 + (gamma_1 - gamma_0) * (gt - g0) / (g1 - g0)


if __name__ == "__main__":
    MIN_VALUE, MAX_VALUE = 1e-4, 10.0
    key = jax.random.PRNGKey(0)
    kx, kp, kx2 = jax.random.split(key, 3)

    B, IN_DIM = 8, 16
    x = jax.random.uniform(kx, (B, IN_DIM), jnp.float32)   # t in [0, 1]
    params = init_params(kp, IN_DIM)

    # Case 1: small batch, single tile, explicit f32 hidden path (tight check).
    out = monotonic_net_forward(x, params, MIN_VALUE, MAX_VALUE,
                                hidden_dtype=jnp.float32)
    out = jax.block_until_ready(out)
    ref = _reference(x, params, MIN_VALUE, MAX_VALUE)
    np.testing.assert_allclose(np.asarray(out), np.asarray(ref),
                               rtol=2e-5, atol=2e-5)

    # Case 2: multi-tile batch grid (exercises the parallel batch tiling), f32.
    B2 = 24
    x2 = jax.random.uniform(kx2, (B2, IN_DIM), jnp.float32)
    out2 = monotonic_net_forward(x2, params, MIN_VALUE, MAX_VALUE,
                                 block_rows=8, hidden_dtype=jnp.float32)
    out2 = jax.block_until_ready(out2)
    ref2 = _reference(x2, params, MIN_VALUE, MAX_VALUE)
    np.testing.assert_allclose(np.asarray(out2), np.asarray(ref2),
                               rtol=2e-5, atol=2e-5)

    # Case 3: default hidden path (bf16 affine/sigmoid + MXU l3 on v6e/v7x,
    # f32 on v2-v5).  Loose tolerance covers the bf16 activations.
    out3 = monotonic_net_forward(x2, params, MIN_VALUE, MAX_VALUE)
    out3 = jax.block_until_ready(out3)
    np.testing.assert_allclose(np.asarray(out3), np.asarray(ref2),
                               rtol=1e-1, atol=5e-1)

    print("KERNEL_OK")
</pallas_src>

<mosaic_0001>
module attributes {stable_mosaic.version = 11 : i64} {
  func.func @_monotonic_kernel(%arg0: i32, %arg1: memref<8x16xf32, #tpu.memory_space<vmem>>, %arg2: memref<1x16xf32, #tpu.memory_space<vmem>>, %arg3: memref<1x1xf32, #tpu.memory_space<vmem>>, %arg4: memref<1x1024xf32, #tpu.memory_space<vmem>>, %arg5: memref<1x1024xf32, #tpu.memory_space<vmem>>, %arg6: memref<1x1024xf32, #tpu.memory_space<vmem>>, %arg7: memref<1x1xf32, #tpu.memory_space<vmem>>, %arg8: memref<1x1xf32, #tpu.memory_space<vmem>>, %arg9: memref<8x1xf32, #tpu.memory_space<vmem>>) attributes {dimension_semantics = [#tpu.dimension_semantics<parallel>], iteration_bounds = array<i64: 1>, scalar_prefetch = 0 : i64, scratch_operands = 0 : i64, tpu.core_type = #tpu.core_type<tc>, window_params = [{transform_indices = @transform_0, window_bounds = array<i64: 8, 16>}, {pipeline_mode = #tpu.pipeline_mode<synchronous>, transform_indices = @transform_1, window_bounds = array<i64: 1, 16>}, {pipeline_mode = #tpu.pipeline_mode<synchronous>, transform_indices = @transform_2, window_bounds = array<i64: 1, 1>}, {pipeline_mode = #tpu.pipeline_mode<synchronous>, transform_indices = @transform_3, window_bounds = array<i64: 1, 1024>}, {pipeline_mode = #tpu.pipeline_mode<synchronous>, transform_indices = @transform_4, window_bounds = array<i64: 1, 1024>}, {pipeline_mode = #tpu.pipeline_mode<synchronous>, transform_indices = @transform_5, window_bounds = array<i64: 1, 1024>}, {pipeline_mode = #tpu.pipeline_mode<synchronous>, transform_indices = @transform_6, window_bounds = array<i64: 1, 1>}, {pipeline_mode = #tpu.pipeline_mode<synchronous>, transform_indices = @transform_7, window_bounds = array<i64: 1, 1>}, {transform_indices = @transform_8, window_bounds = array<i64: 8, 1>}]} {
    %c0 = arith.constant 0 : index
    %c0_0 = arith.constant 0 : index
    %0 = vector.load %arg1[%c0, %c0_0] : memref<8x16xf32, #tpu.memory_space<vmem>>, vector<8x16xf32>
    %c0_1 = arith.constant 0 : index
    %c0_2 = arith.constant 0 : index
    %1 = vector.load %arg2[%c0_1, %c0_2] : memref<1x16xf32, #tpu.memory_space<vmem>>, vector<1x16xf32>
    %c0_3 = arith.constant 0 : index
    %c0_4 = arith.constant 0 : index
    %2 = vector.load %arg3[%c0_3, %c0_4] : memref<1x1xf32, #tpu.memory_space<vmem>>, vector<1x1xf32>
    %3 = vector.broadcast %1 : vector<1x16xf32> to vector<8x16xf32>
    %4 = arith.mulf %0, %3 : vector<8x16xf32>
    %cst = arith.constant dense<0.000000e+00> : vector<8xf32>
    %5 = vector.multi_reduction <add>, %4, %cst [1] : vector<8x16xf32> to vector<8xf32>
    %6 = vector.shape_cast %5 : vector<8xf32> to vector<8x1xf32>
    %7 = vector.broadcast %2 : vector<1x1xf32> to vector<8x1xf32>
    %8 = arith.addf %6, %7 : vector<8x1xf32>
    %c0_5 = arith.constant 0 : index
    %c0_6 = arith.constant 0 : index
    %9 = vector.load %arg4[%c0_5, %c0_6] : memref<1x1024xf32, #tpu.memory_space<vmem>>, vector<1x1024xf32>
    %c0_7 = arith.constant 0 : index
    %c0_8 = arith.constant 0 : index
    %10 = vector.load %arg5[%c0_7, %c0_8] : memref<1x1024xf32, #tpu.memory_space<vmem>>, vector<1x1024xf32>
    %11 = vector.broadcast %8 : vector<8x1xf32> to vector<8x1024xf32>
    %12 = vector.broadcast %9 : vector<1x1024xf32> to vector<8x1024xf32>
    %13 = arith.mulf %11, %12 : vector<8x1024xf32>
    %14 = vector.broadcast %10 : vector<1x1024xf32> to vector<8x1024xf32>
    %15 = arith.addf %13, %14 : vector<8x1024xf32>
    %cst_9 = arith.constant 5.000000e-01 : f32
    %16 = vector.broadcast %cst_9 : f32 to vector<8x1024xf32>
    %17 = arith.mulf %16, %15 : vector<8x1024xf32>
    %18 = math.tanh %17 : vector<8x1024xf32>
    %cst_10 = arith.constant 5.000000e-01 : f32
    %19 = vector.broadcast %cst_10 : f32 to vector<8x1024xf32>
    %20 = arith.mulf %19, %18 : vector<8x1024xf32>
    %cst_11 = arith.constant 5.000000e-01 : f32
    %21 = vector.broadcast %cst_11 : f32 to vector<8x1024xf32>
    %22 = arith.addf %20, %21 : vector<8x1024xf32>
    %c0_12 = arith.constant 0 : index
    %c0_13 = arith.constant 0 : index
    %23 = vector.load %arg6[%c0_12, %c0_13] : memref<1x1024xf32, #tpu.memory_space<vmem>>, vector<1x1024xf32>
    %24 = vector.broadcast %23 : vector<1x1024xf32> to vector<8x1024xf32>
    %25 = arith.mulf %22, %24 : vector<8x1024xf32>
    %cst_14 = arith.constant dense<0.000000e+00> : vector<8xf32>
    %26 = vector.multi_reduction <add>, %25, %cst_14 [1] : vector<8x1024xf32> to vector<8xf32>
    %27 = vector.shape_cast %26 : vector<8xf32> to vector<8x1xf32>
    %28 = arith.addf %8, %27 : vector<8x1xf32>
    %c0_15 = arith.constant 0 : index
    %c0_16 = arith.constant 0 : index
    %29 = vector.load %arg8[%c0_15, %c0_16] : memref<1x1xf32, #tpu.memory_space<vmem>>, vector<1x1xf32>
    %c0_17 = arith.constant 0 : index
    %c0_18 = arith.constant 0 : index
    %30 = vector.load %arg7[%c0_17, %c0_18] : memref<1x1xf32, #tpu.memory_space<vmem>>, vector<1x1xf32>
    %31 = vector.broadcast %30 : vector<1x1xf32> to vector<8x1xf32>
    %32 = arith.mulf %31, %28 : vector<8x1xf32>
    %33 = vector.broadcast %29 : vector<1x1xf32> to vector<8x1xf32>
    %34 = arith.addf %33, %32 : vector<8x1xf32>
    %c0_19 = arith.constant 0 : index
    %c0_20 = arith.constant 0 : index
    %35 = vector.load %arg9[%c0_19, %c0_20] : memref<8x1xf32, #tpu.memory_space<vmem>>, vector<8x1xf32>
    tpu.vector_store %arg9[%c0_19, %c0_20], %34 {strides = array<i32>} : memref<8x1xf32, #tpu.memory_space<vmem>>, vector<8x1xf32>,
    return
  }
  func.func @transform_0(%arg0: i32) -> (i32, i32) {
    %c0_i32 = arith.constant 0 : i32
    %c0_i32_0 = arith.constant 0 : i32
    return %arg0, %c0_i32 : i32, i32
  }
  func.func @transform_1(%arg0: i32) -> (i32, i32) {
    %c0_i32 = arith.constant 0 : i32
    %c0_i32_0 = arith.constant 0 : i32
    %c0_i32_1 = arith.constant 0 : i32
    return %c0_i32, %c0_i32_0 : i32, i32
  }
  func.func @transform_2(%arg0: i32) -> (i32, i32) {
    %c0_i32 = arith.constant 0 : i32
    %c0_i32_0 = arith.constant 0 : i32
    %c0_i32_1 = arith.constant 0 : i32
    return %c0_i32, %c0_i32_0 : i32, i32
  }
  func.func @transform_3(%arg0: i32) -> (i32, i32) {
    %c0_i32 = arith.constant 0 : i32
    %c0_i32_0 = arith.constant 0 : i32
    %c0_i32_1 = arith.constant 0 : i32
    return %c0_i32, %c0_i32_0 : i32, i32
  }
  func.func @transform_4(%arg0: i32) -> (i32, i32) {
    %c0_i32 = arith.constant 0 : i32
    %c0_i32_0 = arith.constant 0 : i32
    %c0_i32_1 = arith.constant 0 : i32
    return %c0_i32, %c0_i32_0 : i32, i32
  }
  func.func @transform_5(%arg0: i32) -> (i32, i32) {
    %c0_i32 = arith.constant 0 : i32
    %c0_i32_0 = arith.constant 0 : i32
    %c0_i32_1 = arith.constant 0 : i32
    return %c0_i32, %c0_i32_0 : i32, i32
  }
  func.func @transform_6(%arg0: i32) -> (i32, i32) {
    %c0_i32 = arith.constant 0 : i32
    %c0_i32_0 = arith.constant 0 : i32
    %c0_i32_1 = arith.constant 0 : i32
    return %c0_i32, %c0_i32_0 : i32, i32
  }
  func.func @transform_7(%arg0: i32) -> (i32, i32) {
    %c0_i32 = arith.constant 0 : i32
    %c0_i32_0 = arith.constant 0 : i32
    %c0_i32_1 = arith.constant 0 : i32
    return %c0_i32, %c0_i32_0 : i32, i32
  }
  func.func @transform_8(%arg0: i32) -> (i32, i32) {
    %c0_i32 = arith.constant 0 : i32
    %c0_i32_0 = arith.constant 0 : i32
    return %arg0, %c0_i32 : i32, i32
  }
}

</mosaic_0001>

<bundles_post_ra>
// kernel: tpu_custom_call.1
= control target key start
LH: loop header
LB: loop body
LE: loop exit
PB: predicated region body
PF: predicated region fallthrough
CT: control target
= control target key end

     0   :  { %s458_s0 = inlined_call_operand.hbm [shape: f32[8,16], index: 0, kind: input, shape index: {}]   ;;  %s459_s1 = inlined_call_operand.hbm [shape: f32[1,16], index: 1, kind: input, shape index: {}]   ;;  %s460_s2 = inlined_call_operand.<no memory space> [shape: f32[1,1], index: 2, kind: input, shape index: {}]   ;;  %s461_s3 = inlined_call_operand.hbm [shape: f32[1,1024], index: 3, kind: input, shape index: {}]   ;;  %s462_s4 = inlined_call_operand.vmem [shape: f32[1,1024], index: 4, kind: input, shape index: {}]   ;;  %s463_s5 = inlined_call_operand.hbm [shape: f32[1,1024], index: 5, kind: input, shape index: {}]   ;;  %s464_s8 = inlined_call_operand.vmem [shape: f32[8,1], index: 8, kind: output, shape index: {}]   ;;  %s465_s6 = inlined_call_operand.<no memory space> [shape: f32[1,1], index: 6, kind: input, shape index: {}]   ;;  %s466_s7 = inlined_call_operand.<no memory space> [shape: f32[1,1], index: 7, kind: input, shape index: {}]  }
   0x1   :  { %v13_v0 = vstv %s460_s2  ;;  %v15_v1 = vstv %s465_s6  ;;  %v17_v2 = vstv %s466_s7 }
   0x2   :  { %14 = vst [vmem:[#allocation2] sm:$0x1] %v13_v0 }
   0x3   :  { %16 = vst [vmem:[#allocation3] sm:$0x1] %v15_v1 }
   0x4   :  { %18 = vst [vmem:[#allocation4] sm:$0x1] %v17_v2 }
   0x5   :  { %19 = vsyncpa [#allocation6], 0 }
   0x6   :  { %20 = vsyncpa [#allocation8], 0  ;;  %s38_s13 = sshll.u32 %s459_s1, 4  ;;  %s39_s13 = int_to_ptr.hbm [resolvable:$true] %s38_s13 }
   0x7   :  { %21 = vsyncpa [#allocation11], 0  ;;  %s377_s2 = smov [#allocation7]   ;;  %s27_s16 = sshll.u32 %s458_s0, 4  ;;  %s28_s16 = int_to_ptr.hbm [resolvable:$true] %s27_s16 }
   0x8   :  { %s40_s14 = sshll.u32 %s377_s2, 4  ;;  %s378_s7 = smov [#allocation5]   ;;  %s41_s14 = int_to_ptr.vmem [resolvable:$true] %s40_s14 }
   0x9   :  { %43 = dma.hbm_to_vmem [thread:$0]  %s39_s13, 16, %s41_s14, [#allocation8]  }
   0xa   :  { %s29_s17 = sshll.u32 %s378_s7, 4  ;;  %s51_s20 = sshll.u32 %s461_s3, 4  ;;  %s30_s17 = int_to_ptr.vmem [resolvable:$true] %s29_s17  ;;  %s52_s20 = int_to_ptr.hbm [resolvable:$true] %s51_s20 }
   0xb   :  { %32 = dma.hbm_to_vmem [thread:$0]  %s28_s16, 128, %s30_s17, [#allocation6]  }
   0xc   :  { %s64_s22 = sshll.u32 %s463_s5, 4  ;;  %s379_s23 = smov [#allocation9]   ;;  %s65_s22 = int_to_ptr.hbm [resolvable:$true] %s64_s22 }
   0xd   :  { %s53_s24 = sshll.u32 %s379_s23, 4  ;;  %s380_s0 = smov [#allocation10]   ;;  %s54_s24 = int_to_ptr.vmem [resolvable:$true] %s53_s24 }
   0xe   :  { %56 = dma.hbm_to_vmem [thread:$0]  %s52_s20, 128, %s54_s24, [#allocation8]  }
   0xf   :  { %s66_s25 = sshll.u32 %s380_s0, 4  ;;  %s67_s25 = int_to_ptr.vmem [resolvable:$true] %s66_s25 }
  0x10   :  { %69 = dma.hbm_to_vmem [thread:$0]  %s65_s22, 128, %s67_s25, [#allocation11]  }
  0x11   :  { %371 = dma.done.wait [#allocation6], 128  }
  0x12   :  { %372 = vsyncadd [#allocation6], 4294967168 }
  0x13   :  { %373 = dma.done.wait [#allocation8], 144  }
  0x14   :  { %374 = vsyncadd [#allocation8], 4294967152 }
  0x15   :  { %375 = dma.done.wait [#allocation11], 128  }
  0x16   :  { %376 = vsyncadd [#allocation11], 4294967168  ;;  %v90_v3 = vld [vmem:[#allocation5] sm:$0xff]  ;;  %v255_v4 = vld [vmem:[#allocation7] ss:$0 sm:$0xff]  ;;  %vm97_vm0 = vcmask 130048  }
  0x17   :  { %v96_v5 = vmul.f32 %v255_v4, %v90_v3  ;;  %v381_v7 = vmov 0   ;;  %v256_v8 = vld [vmem:[#allocation2] ss:$0 sm:$0xff]  ;;  %v105_v11 = vld [vmem:[#allocation9] sm:$0xff]  ;;  %v194_v54 = vld [vmem:[#allocation10] sm:$0xff]  ;;  %vm240_vm1 = vcmask 7168  }
  0x18   :  { %254 = vset.pattern.permute.xlu0 %v381_v7  ;;  %v106_v12 = vld [vmem:[%s462_s4] sm:$0xff]  ;;  %v113_v13 = vperm.slane %v105_v11, 0  ;;  %v114_v14 = vperm.slane %v105_v11, 1  ;;  %v115_v15 = vperm.slane %v105_v11, 2  ;;  %v116_v16 = vperm.slane %v105_v11, 3 }
  0x19   :  { %v98_v6 = vsel %vm97_vm0, %v96_v5, 0.0  ;;  %v117_v17 = vperm.slane %v105_v11, 4  ;;  %v118_v18 = vperm.slane %v105_v11, 5  ;;  %v119_v19 = vperm.slane %v105_v11, 6 }
  0x1a   :  { %99 = vadd.xlane.f32.xlu0 %v98_v6  ;;  %v120_v20 = vperm.slane %v105_v11, 7  ;;  %v138_v21 = vperm.slane %v106_v12, 0  ;;  %v139_v22 = vperm.slane %v106_v12, 1  ;;  %v140_v23 = vperm.slane %v106_v12, 2 }
  0x1b   :  { %v141_v24 = vperm.slane %v106_v12, 3  ;;  %v142_v26 = vperm.slane %v106_v12, 4  ;;  %v143_v27 = vperm.slane %v106_v12, 5  ;;  %v144_v28 = vperm.slane %v106_v12, 6 }
  0x1c   :  { %v145_v29 = vperm.slane %v106_v12, 7  ;;  %v196_v58 = vperm.slane %v194_v54, 0  ;;  %v197_v61 = vperm.slane %v194_v54, 1  ;;  %v198_v4 = vperm.slane %v194_v54, 2 }
  0x8d   :  { %v100_v9 = vpop.xlane.xlu0 %99 }
  0x8e   :  { %v448_v10 = vadd.f32 %v256_v8, %v100_v9 }
  0x90   :  { %109 = vperm.xlu0 %254, %v448_v10  }
 0x102   :  { %v110_v25 = vpop.permute.xlu0 %109 }
 0x103   :  { %v129_v30 = vmul.f32 %v113_v13, %v110_v25  ;;  %v130_v31 = vmul.f32 %v114_v14, %v110_v25  ;;  %v131_v32 = vmul.f32 %v115_v15, %v110_v25  ;;  %v132_v33 = vmul.f32 %v116_v16, %v110_v25 }
 0x104   :  { %v133_v34 = vmul.f32 %v117_v17, %v110_v25  ;;  %v134_v35 = vmul.f32 %v118_v18, %v110_v25  ;;  %v135_v36 = vmul.f32 %v119_v19, %v110_v25  ;;  %v136_v37 = vmul.f32 %v120_v20, %v110_v25 }
 0x105   :  { %v154_v38 = vadd.f32 %v138_v21, %v129_v30  ;;  %v155_v39 = vadd.f32 %v139_v22, %v130_v31  ;;  %v156_v40 = vadd.f32 %v140_v23, %v131_v32  ;;  %v157_v41 = vadd.f32 %v141_v24, %v132_v33 }
 0x106   :  { %v158_v42 = vadd.f32 %v142_v26, %v133_v34  ;;  %v159_v43 = vadd.f32 %v143_v27, %v134_v35  ;;  %v160_v46 = vadd.f32 %v144_v28, %v135_v36  ;;  %v161_v48 = vadd.f32 %v145_v29, %v136_v37 }
 0x107   :  { %v162_v44 = vmul.f32 0.5, %v154_v38  ;;  %v163_v45 = vmul.f32 0.5, %v155_v39  ;;  %v164_v47 = vmul.f32 0.5, %v156_v40  ;;  %v165_v49 = vmul.f32 0.5, %v157_v41  ;;  %v257_v39 = vld [vmem:[#allocation3] ss:$0 sm:$0xff] }
 0x108   :  { %v166_v50 = vmul.f32 0.5, %v158_v42  ;;  %v167_v51 = vmul.f32 0.5, %v159_v43  ;;  %v168_v52 = vmul.f32 0.5, %v160_v46  ;;  %v169_v53 = vmul.f32 0.5, %v161_v48  ;;  %v258_v41 = vld [vmem:[#allocation4] ss:$0 sm:$0xff] }
 0x109   :  { %259 = vtanh.f32 %v162_v44  ;;  %v199_v13 = vperm.slane %v194_v54, 3  ;;  %v200_v16 = vperm.slane %v194_v54, 4  ;;  %v201_v21 = vperm.slane %v194_v54, 5 }
 0x10a   :  { %261 = vtanh.f32 %v163_v45  ;;  %v202_v27 = vperm.slane %v194_v54, 6  ;;  %v203_v31 = vperm.slane %v194_v54, 7 }
 0x10b   :  { %263 = vtanh.f32 %v164_v47 }
 0x10c   :  { %265 = vtanh.f32 %v165_v49 }
 0x10d   :  { %267 = vtanh.f32 %v166_v50 }
 0x10e   :  { %269 = vtanh.f32 %v167_v51 }
 0x10f   :  { %v260_v55 = vpop.eup %259  ;;  %271 = vtanh.f32 %v168_v52 }
 0x110   :  { %v262_v56 = vpop.eup %261  ;;  %273 = vtanh.f32 %v169_v53  ;;  %v178_v57 = vmul.f32 0.5, %v260_v55 }
 0x111   :  { %v264_v59 = vpop.eup %263  ;;  %v179_v60 = vmul.f32 0.5, %v262_v56 }
 0x112   :  { %v266_v62 = vpop.eup %265  ;;  %v180_v63 = vmul.f32 0.5, %v264_v59  ;;  %v186_v0 = vadd.f32 0.5, %v178_v57 }
 0x113   :  { %v268_v1 = vpop.eup %267  ;;  %v181_v2 = vmul.f32 0.5, %v266_v62  ;;  %v187_v3 = vadd.f32 0.5, %v179_v60 }
 0x114   :  { %v270_v5 = vpop.eup %269  ;;  %v182_v6 = vmul.f32 0.5, %v268_v1  ;;  %v188_v7 = vadd.f32 0.5, %v180_v63  ;;  %v212_v8 = vmul.f32 %v196_v58, %v186_v0 }
 0x115   :  { %v272_v9 = vpop.eup %271  ;;  %v183_v11 = vmul.f32 0.5, %v270_v5  ;;  %v189_v12 = vadd.f32 0.5, %v181_v2  ;;  %v213_v14 = vmul.f32 %v197_v61, %v187_v3 }
 0x116   :  { %v274_v15 = vpop.eup %273  ;;  %v184_v17 = vmul.f32 0.5, %v272_v9  ;;  %v190_v18 = vadd.f32 0.5, %v182_v6  ;;  %v214_v19 = vmul.f32 %v198_v4, %v188_v7 }
 0x117   :  { %v220_v20 = vadd.f32 %v213_v14, %v212_v8  ;;  %v185_v22 = vmul.f32 0.5, %v274_v15  ;;  %v191_v23 = vadd.f32 0.5, %v183_v11  ;;  %v215_v24 = vmul.f32 %v199_v13, %v189_v12 }
 0x118   :  { %v192_v26 = vadd.f32 0.5, %v184_v17  ;;  %v216_v28 = vmul.f32 %v200_v16, %v190_v18 }
 0x119   :  { %v221_v25 = vadd.f32 %v220_v20, %v214_v19  ;;  %v193_v30 = vadd.f32 0.5, %v185_v22  ;;  %v217_v32 = vmul.f32 %v201_v21, %v191_v23 }
 0x11a   :  { %v218_v34 = vmul.f32 %v202_v27, %v192_v26 }
 0x11b   :  { %v222_v29 = vadd.f32 %v221_v25, %v215_v24  ;;  %v219_v36 = vmul.f32 %v203_v31, %v193_v30 }
 0x11d   :  { %v223_v33 = vadd.f32 %v222_v29, %v216_v28 }
 0x11f   :  { %v224_v35 = vadd.f32 %v223_v33, %v217_v32 }
 0x121   :  { %v225_v37 = vadd.f32 %v224_v35, %v218_v34 }
 0x123   :  { %v226_v38 = vadd.f32 %v225_v37, %v219_v36 }
 0x125   :  { %227 = vadd.xlane.f32.xlu1 %v226_v38 }
 0x198   :  { %v228_v40 = vpop.xlane.xlu1 %227 }
 0x199   :  { %v229_v42 = vadd.f32 %v228_v40, %v448_v10 }
 0x19b   :  { %v235_v43 = vmul.f32 %v257_v39, %v229_v42 }
 0x19d   :  { %v239_v44 = vadd.f32 %v258_v41, %v235_v43 }
 0x19f   :  { %241 = vst.msk [vmem:[%s464_s8] sm:$0xff] %vm240_vm1, %v239_v44 }
 0x1a0   :  { %246 = vsyncpa [#allocation6], 1 }
 0x1a1   :  { %247 = vsyncpa [#allocation8], 1 }
 0x1a2   :  { %248 = vsyncpa [#allocation11], 1 }

</bundles_post_ra>
